<compile_context>
chip_gen: v6e
topology: v6e:2x2x1
jax: 0.10.0
libtpu: 0.0.40
codegen_flags: <defaults>
</compile_context>

<pallas_src>
import jax
import jax.numpy as jnp
from jax.experimental import pallas as pl
from jax.experimental.pallas import tpu as pltpu

_BN_EPS = 1e-5


# ------------------------------- kernel -------------------------------------
def _make_fused_kernel(w_img, hw, c2, c1h, ctot, cmid, cout):
    """Fully fused UpAlong forward for one image (flattened H*W lane axis)."""
    taps = [(dy, dx) for dy in range(3) for dx in range(3)]

    def kernel(a1_ref, a2_ref, wup_ref, scat_ref, w1_ref, sh1_ref,
               w2_ref, sh2_ref, o_ref, col1_ref, col2_ref):
        # ---- Stage 1: ConvTranspose2d(k=2, s=2) emitted directly in the
        # interleaved flat (Ctot, H*W) layout via 0/1 scatter matmuls.
        # wup rows [0:c2] are zero; a2_ref rows [c2:] are zero, so the sum is
        # exactly the [skip ; upsampled] concatenation.  The conv-transpose
        # bias is folded into shift1 host-side.
        a1 = a1_ref[0].astype(jnp.float32)                       # (Cin, H1*W1)
        xcat = a2_ref[0].astype(jnp.float32)                     # (Ctot, HW)
        for p in range(4):                                       # 2x2 phases
            ph = jnp.dot(wup_ref[p], a1,
                         preferred_element_type=jnp.float32)     # (Ctot, H1*W1)
            xcat = xcat + jnp.dot(ph, scat_ref[p],
                                  preferred_element_type=jnp.float32)

        # ---- Stage 2: conv1 (3x3 VALID) + folded BN + ReLU as ONE matmul
        # with K = 9*Ctot.  Tap (dy,dx) == circular lane shift of dy*W+dx;
        # wrapped border lanes are finite don't-cares never read by any valid
        # downstream output (cropped at the very end).
        for t, (dy, dx) in enumerate(taps):
            s = dy * w_img + dx
            shifted = xcat if s == 0 else pltpu.roll(xcat, (-s) % hw, axis=1)
            col1_ref[pl.ds(t * ctot, ctot), :] = shifted
        y1 = jnp.maximum(
            jnp.dot(w1_ref[...], col1_ref[...],
                    preferred_element_type=jnp.float32) + sh1_ref[...], 0.0)

        # ---- Stage 3: conv2 (3x3 VALID) + folded BN + ReLU, K = 9*Cmid.
        for t, (dy, dx) in enumerate(taps):
            s = dy * w_img + dx
            shifted = y1 if s == 0 else pltpu.roll(y1, (-s) % hw, axis=1)
            col2_ref[pl.ds(t * cmid, cmid), :] = shifted
        acc = jnp.dot(w2_ref[...], col2_ref[...],
                      preferred_element_type=jnp.float32)
        # lane-dense full-width store (HW is a multiple of 128 here).
        o_ref[0] = jnp.maximum(acc + sh2_ref[...], 0.0).astype(o_ref.dtype)

    return kernel


# --------------------------- host-side helpers ------------------------------
def _upsample_scatter(h1, w1):
    """4 x (H1*W1, 4*H1*W1) 0/1 matrices: phase (di,dj) of the stride-2
    transposed conv scatters flat (H1,W1) positions into flat (2H1,2W1)."""
    w = 2 * w1
    ii, jj = jnp.meshgrid(jnp.arange(h1), jnp.arange(w1), indexing="ij")
    mats = []
    for di in range(2):
        for dj in range(2):
            dst = ((2 * ii + di) * w + (2 * jj + dj)).reshape(-1)
            mats.append(jax.nn.one_hot(dst, 2 * h1 * w, dtype=jnp.float32))
    return jnp.stack(mats, axis=0)                               # (4, P1, HW)


def up_along_forward(params, a1, a2):
    """Forward pass of UpAlong (inference-mode BatchNorm), fully fused."""
    n, cin, h1, w1 = a1.shape
    c1h = cin // 2
    _, c2, h2, w2 = a2.shape
    h, w = 2 * h1, 2 * w1
    hw = h * w
    p1 = h1 * w1
    ctot = c2 + c1h
    cmid = params["c1_w"].shape[0]
    cout = params["c2_w"].shape[0]
    assert h >= 5 and w >= 5, "two VALID 3x3 convs need spatial size >= 5"

    # center-crop a2 to the upsampled size (PyTorch negative F.pad semantics).
    # TODO(synk): only the crop case (a2 spatially >= upsampled a1) is handled.
    diff_y = h2 - h
    diff_x = w2 - w
    pad_l = -diff_x // 2
    pad_r = diff_x // 2 - diff_x
    pad_t = -diff_y // 2
    pad_b = diff_y // 2 - diff_y
    a2c = a2[:, :, -pad_t:h2 + pad_b, -pad_l:w2 + pad_r]
    assert a2c.shape[2] == h and a2c.shape[3] == w, "crop/concat size mismatch"

    # flatten; zero-pad the skip tensor to Ctot channels (up rows are written
    # by the in-kernel upsample, so no misaligned sublane stores are needed).
    a1_flat = a1.reshape(n, cin, p1)
    a2p = jnp.concatenate(
        [a2c.reshape(n, c2, hw), jnp.zeros((n, c1h, hw), a2.dtype)], axis=1)

    # ---- host-side weight folding (tiny, constant-folded under jit) --------
    # ConvTranspose weights, phase-major, zero-padded to Ctot output rows.
    wup = jnp.transpose(params["up_w"], (2, 3, 1, 0)).reshape(4, c1h, cin)
    wup = jnp.concatenate([jnp.zeros((4, c2, cin), wup.dtype), wup], axis=1)
    scat = _upsample_scatter(h1, w1)

    s1 = params["bn1_g"] / jnp.sqrt(params["bn1_v"] + _BN_EPS)
    s2 = params["bn2_g"] / jnp.sqrt(params["bn2_v"] + _BN_EPS)
    # im2col weights (Cout, 9*Cin), tap-major to match the kernel's col layout,
    # with the BN scale folded in.
    w1col = (jnp.transpose(params["c1_w"], (0, 2, 3, 1)).reshape(cmid, 9 * ctot)
             * s1[:, None])
    w2col = (jnp.transpose(params["c2_w"], (0, 2, 3, 1)).reshape(cout, 9 * cmid)
             * s2[:, None])
    # fold conv bias, BN shift and the ConvTranspose-bias contribution.
    upbias = jnp.sum(params["c1_w"][:, c2:, :, :]
                     * params["up_b"][None, :, None, None], axis=(1, 2, 3))
    shift1 = (params["bn1_b"]
              + (params["c1_b"] + upbias - params["bn1_m"]) * s1).reshape(cmid, 1)
    shift2 = (params["bn2_b"]
              + (params["c2_b"] - params["bn2_m"]) * s2).reshape(cout, 1)

    kernel = _make_fused_kernel(w, hw, c2, c1h, ctot, cmid, cout)

    y = pl.pallas_call(
        kernel,
        out_shape=jax.ShapeDtypeStruct((n, cout, hw), a1.dtype),
        grid_spec=pltpu.PrefetchScalarGridSpec(
            num_scalar_prefetch=0,
            grid=(n,),
            in_specs=[
                pl.BlockSpec((1, cin, p1), lambda i: (i, 0, 0)),       # a1
                pl.BlockSpec((1, ctot, hw), lambda i: (i, 0, 0)),      # a2 (padded)
                pl.BlockSpec((4, ctot, cin), lambda i: (0, 0, 0)),     # up weights
                pl.BlockSpec((4, p1, hw), lambda i: (0, 0, 0)),        # scatter mats
                pl.BlockSpec((cmid, 9 * ctot), lambda i: (0, 0)),      # w1 (im2col)
                pl.BlockSpec((cmid, 1), lambda i: (0, 0)),             # shift1
                pl.BlockSpec((cout, 9 * cmid), lambda i: (0, 0)),      # w2 (im2col)
                pl.BlockSpec((cout, 1), lambda i: (0, 0)),             # shift2
            ],
            out_specs=pl.BlockSpec((1, cout, hw), lambda i: (i, 0, 0)),
            scratch_shapes=[
                pltpu.VMEM((9 * ctot, hw), jnp.float32),               # im2col conv1
                pltpu.VMEM((9 * cmid, hw), jnp.float32),               # im2col conv2
            ],
        ),
        compiler_params=pltpu.CompilerParams(
            dimension_semantics=("parallel",)),
    )(a1_flat, a2p, wup, scat, w1col, shift1, w2col, shift2)

    # valid region of two stacked VALID 3x3 convs (flat layout is exact there).
    return y.reshape(n, cout, h, w)[:, :, :h - 4, :w - 4]


# ------------------------------ reference -----------------------------------
def _reference_up_along(params, a1, a2, eps=_BN_EPS):
    n, c1, h1, w1 = a1.shape
    c1h = c1 // 2
    up6 = jnp.einsum("ncij,codk->noidjk", a1, params["up_w"],
                     precision=jax.lax.Precision.HIGHEST)
    up = up6.reshape(n, c1h, 2 * h1, 2 * w1) + params["up_b"][None, :, None, None]
    h2, w2 = a2.shape[2], a2.shape[3]
    diff_y = h2 - up.shape[2]
    diff_x = w2 - up.shape[3]
    pad_l = -diff_x // 2
    pad_r = diff_x // 2 - diff_x
    pad_t = -diff_y // 2
    pad_b = diff_y // 2 - diff_y
    a2c = a2[:, :, -pad_t:h2 + pad_b, -pad_l:w2 + pad_r]
    x = jnp.concatenate([a2c, up], axis=1)

    def conv_bn_relu(xi, wc, bc, g, be, m, v):
        y = jax.lax.conv_general_dilated(
            xi, wc, window_strides=(1, 1), padding="VALID",
            dimension_numbers=("NCHW", "OIHW", "NCHW"),
            precision=jax.lax.Precision.HIGHEST)
        y = y + bc[None, :, None, None]
        y = ((y - m[None, :, None, None])
             / jnp.sqrt(v[None, :, None, None] + eps)
             * g[None, :, None, None] + be[None, :, None, None])
        return jnp.maximum(y, 0.0)

    y = conv_bn_relu(x, params["c1_w"], params["c1_b"], params["bn1_g"],
                     params["bn1_b"], params["bn1_m"], params["bn1_v"])
    y = conv_bn_relu(y, params["c2_w"], params["c2_b"], params["bn2_g"],
                     params["bn2_b"], params["bn2_m"], params["bn2_v"])
    return y


if __name__ == "__main__":
    key = jax.random.PRNGKey(0)
    ks = jax.random.split(key, 16)
    in_channels, out_channels = 8, 8          # UpAlong(in_channels, out_channels)
    c_half = in_channels // 2
    mid = out_channels                        # DoubleConv: mid_channels = out

    params = {
        "up_w": 0.3 * jax.random.normal(ks[0], (in_channels, c_half, 2, 2), jnp.float32),
        "up_b": 0.1 * jax.random.normal(ks[1], (c_half,), jnp.float32),
        "c1_w": 0.2 * jax.random.normal(ks[2], (mid, in_channels, 3, 3), jnp.float32),
        "c1_b": 0.1 * jax.random.normal(ks[3], (mid,), jnp.float32),
        "bn1_g": 1.0 + 0.1 * jax.random.normal(ks[4], (mid,), jnp.float32),
        "bn1_b": 0.1 * jax.random.normal(ks[5], (mid,), jnp.float32),
        "bn1_m": 0.1 * jax.random.normal(ks[6], (mid,), jnp.float32),
        "bn1_v": 0.5 + jnp.abs(jax.random.normal(ks[7], (mid,), jnp.float32)),
        "c2_w": 0.2 * jax.random.normal(ks[8], (out_channels, mid, 3, 3), jnp.float32),
        "c2_b": 0.1 * jax.random.normal(ks[9], (out_channels,), jnp.float32),
        "bn2_g": 1.0 + 0.1 * jax.random.normal(ks[10], (out_channels,), jnp.float32),
        "bn2_b": 0.1 * jax.random.normal(ks[11], (out_channels,), jnp.float32),
        "bn2_m": 0.1 * jax.random.normal(ks[12], (out_channels,), jnp.float32),
        "bn2_v": 0.5 + jnp.abs(jax.random.normal(ks[13], (out_channels,), jnp.float32)),
    }

    # a1: decoder feature (8 ch, 8x8) -> upsampled to (4 ch, 16x16);
    # a2: skip feature (4 ch, 20x20) -> cropped to 16x16; concat (8 ch);
    # DoubleConv (two VALID 3x3) -> (8 ch, 12x12).
    a1 = jax.random.normal(ks[14], (2, in_channels, 8, 8), jnp.float32)
    a2 = jax.random.normal(ks[15], (2, c_half, 20, 20), jnp.float32)

    fwd = jax.jit(up_along_forward)
    out = jax.block_until_ready(fwd(params, a1, a2))

    ref = _reference_up_along(params, a1, a2)
    assert out.shape == (2, out_channels, 12, 12), out.shape
    max_err = float(jnp.max(jnp.abs(out - ref)))
    assert jnp.allclose(out, ref, atol=1e-3, rtol=1e-3), max_err

    print("KERNEL_OK")
</pallas_src>

<mosaic_0001>
module attributes {stable_mosaic.version = 11 : i64} {
  func.func @kernel(%arg0: i32, %arg1: memref<1x8x64xf32, #tpu.memory_space<vmem>>, %arg2: memref<1x8x256xf32, #tpu.memory_space<vmem>>, %arg3: memref<4x8x8xf32, #tpu.memory_space<vmem>>, %arg4: memref<4x64x256xf32, #tpu.memory_space<vmem>>, %arg5: memref<8x72xf32, #tpu.memory_space<vmem>>, %arg6: memref<8x1xf32, #tpu.memory_space<vmem>>, %arg7: memref<8x72xf32, #tpu.memory_space<vmem>>, %arg8: memref<8x1xf32, #tpu.memory_space<vmem>>, %arg9: memref<1x8x256xf32, #tpu.memory_space<vmem>>, %arg10: memref<72x256xf32, #tpu.memory_space<vmem>>, %arg11: memref<72x256xf32, #tpu.memory_space<vmem>>) attributes {dimension_semantics = [#tpu.dimension_semantics<parallel>], iteration_bounds = array<i64: 2>, scalar_prefetch = 0 : i64, scratch_operands = 2 : i64, tpu.core_type = #tpu.core_type<tc>, window_params = [{transform_indices = @transform_0, window_bounds = array<i64: 1, 8, 64>}, {transform_indices = @transform_1, window_bounds = array<i64: 1, 8, 256>}, {pipeline_mode = #tpu.pipeline_mode<synchronous>, transform_indices = @transform_2, window_bounds = array<i64: 4, 8, 8>}, {pipeline_mode = #tpu.pipeline_mode<synchronous>, transform_indices = @transform_3, window_bounds = array<i64: 4, 64, 256>}, {pipeline_mode = #tpu.pipeline_mode<synchronous>, transform_indices = @transform_4, window_bounds = array<i64: 8, 72>}, {pipeline_mode = #tpu.pipeline_mode<synchronous>, transform_indices = @transform_5, window_bounds = array<i64: 8, 1>}, {pipeline_mode = #tpu.pipeline_mode<synchronous>, transform_indices = @transform_6, window_bounds = array<i64: 8, 72>}, {pipeline_mode = #tpu.pipeline_mode<synchronous>, transform_indices = @transform_7, window_bounds = array<i64: 8, 1>}, {transform_indices = @transform_8, window_bounds = array<i64: 1, 8, 256>}]} {
    %c0 = arith.constant 0 : index
    %c0_0 = arith.constant 0 : index
    %c0_1 = arith.constant 0 : index
    %0 = vector.load %arg1[%c0, %c0_0, %c0_1] : memref<1x8x64xf32, #tpu.memory_space<vmem>>, vector<1x8x64xf32>
    %1 = vector.shape_cast %0 : vector<1x8x64xf32> to vector<8x64xf32>
    %c0_2 = arith.constant 0 : index
    %c0_3 = arith.constant 0 : index
    %c0_4 = arith.constant 0 : index
    %2 = vector.load %arg2[%c0_2, %c0_3, %c0_4] : memref<1x8x256xf32, #tpu.memory_space<vmem>>, vector<1x8x256xf32>
    %3 = vector.shape_cast %2 : vector<1x8x256xf32> to vector<8x256xf32>
    %c0_5 = arith.constant 0 : index
    %c0_6 = arith.constant 0 : index
    %c0_7 = arith.constant 0 : index
    %4 = vector.load %arg3[%c0_5, %c0_6, %c0_7] : memref<4x8x8xf32, #tpu.memory_space<vmem>>, vector<1x8x8xf32>
    %5 = vector.shape_cast %4 : vector<1x8x8xf32> to vector<8x8xf32>
    %cst = arith.constant dense<0.000000e+00> : vector<8x64xf32>
    %6 = tpu.matmul %5, %1, %cst {dimension_numbers = #tpu.dot_dimension_numbers<[1], [0], [0], [1], [0, 0, 1, 1], [], []>} : vector<8x8xf32>, vector<8x64xf32>, vector<8x64xf32> -> vector<8x64xf32>
    %c0_8 = arith.constant 0 : index
    %c0_9 = arith.constant 0 : index
    %c0_10 = arith.constant 0 : index
    %7 = vector.load %arg4[%c0_8, %c0_9, %c0_10] : memref<4x64x256xf32, #tpu.memory_space<vmem>>, vector<1x64x256xf32>
    %8 = vector.shape_cast %7 : vector<1x64x256xf32> to vector<64x256xf32>
    %cst_11 = arith.constant dense<0.000000e+00> : vector<8x256xf32>
    %9 = tpu.matmul %6, %8, %cst_11 {dimension_numbers = #tpu.dot_dimension_numbers<[1], [0], [0], [1], [0, 0, 1, 1], [], []>} : vector<8x64xf32>, vector<64x256xf32>, vector<8x256xf32> -> vector<8x256xf32>
    %10 = arith.addf %3, %9 : vector<8x256xf32>
    %c1 = arith.constant 1 : index
    %c0_12 = arith.constant 0 : index
    %c0_13 = arith.constant 0 : index
    %11 = vector.load %arg3[%c1, %c0_12, %c0_13] : memref<4x8x8xf32, #tpu.memory_space<vmem>>, vector<1x8x8xf32>
    %12 = vector.shape_cast %11 : vector<1x8x8xf32> to vector<8x8xf32>
    %cst_14 = arith.constant dense<0.000000e+00> : vector<8x64xf32>
    %13 = tpu.matmul %12, %1, %cst_14 {dimension_numbers = #tpu.dot_dimension_numbers<[1], [0], [0], [1], [0, 0, 1, 1], [], []>} : vector<8x8xf32>, vector<8x64xf32>, vector<8x64xf32> -> vector<8x64xf32>
    %c1_15 = arith.constant 1 : index
    %c0_16 = arith.constant 0 : index
    %c0_17 = arith.constant 0 : index
    %14 = vector.load %arg4[%c1_15, %c0_16, %c0_17] : memref<4x64x256xf32, #tpu.memory_space<vmem>>, vector<1x64x256xf32>
    %15 = vector.shape_cast %14 : vector<1x64x256xf32> to vector<64x256xf32>
    %cst_18 = arith.constant dense<0.000000e+00> : vector<8x256xf32>
    %16 = tpu.matmul %13, %15, %cst_18 {dimension_numbers = #tpu.dot_dimension_numbers<[1], [0], [0], [1], [0, 0, 1, 1], [], []>} : vector<8x64xf32>, vector<64x256xf32>, vector<8x256xf32> -> vector<8x256xf32>
    %17 = arith.addf %10, %16 : vector<8x256xf32>
    %c2 = arith.constant 2 : index
    %c0_19 = arith.constant 0 : index
    %c0_20 = arith.constant 0 : index
    %18 = vector.load %arg3[%c2, %c0_19, %c0_20] : memref<4x8x8xf32, #tpu.memory_space<vmem>>, vector<1x8x8xf32>
    %19 = vector.shape_cast %18 : vector<1x8x8xf32> to vector<8x8xf32>
    %cst_21 = arith.constant dense<0.000000e+00> : vector<8x64xf32>
    %20 = tpu.matmul %19, %1, %cst_21 {dimension_numbers = #tpu.dot_dimension_numbers<[1], [0], [0], [1], [0, 0, 1, 1], [], []>} : vector<8x8xf32>, vector<8x64xf32>, vector<8x64xf32> -> vector<8x64xf32>
    %c2_22 = arith.constant 2 : index
    %c0_23 = arith.constant 0 : index
    %c0_24 = arith.constant 0 : index
    %21 = vector.load %arg4[%c2_22, %c0_23, %c0_24] : memref<4x64x256xf32, #tpu.memory_space<vmem>>, vector<1x64x256xf32>
    %22 = vector.shape_cast %21 : vector<1x64x256xf32> to vector<64x256xf32>
    %cst_25 = arith.constant dense<0.000000e+00> : vector<8x256xf32>
    %23 = tpu.matmul %20, %22, %cst_25 {dimension_numbers = #tpu.dot_dimension_numbers<[1], [0], [0], [1], [0, 0, 1, 1], [], []>} : vector<8x64xf32>, vector<64x256xf32>, vector<8x256xf32> -> vector<8x256xf32>
    %24 = arith.addf %17, %23 : vector<8x256xf32>
    %c3 = arith.constant 3 : index
    %c0_26 = arith.constant 0 : index
    %c0_27 = arith.constant 0 : index
    %25 = vector.load %arg3[%c3, %c0_26, %c0_27] : memref<4x8x8xf32, #tpu.memory_space<vmem>>, vector<1x8x8xf32>
    %26 = vector.shape_cast %25 : vector<1x8x8xf32> to vector<8x8xf32>
    %cst_28 = arith.constant dense<0.000000e+00> : vector<8x64xf32>
    %27 = tpu.matmul %26, %1, %cst_28 {dimension_numbers = #tpu.dot_dimension_numbers<[1], [0], [0], [1], [0, 0, 1, 1], [], []>} : vector<8x8xf32>, vector<8x64xf32>, vector<8x64xf32> -> vector<8x64xf32>
    %c3_29 = arith.constant 3 : index
    %c0_30 = arith.constant 0 : index
    %c0_31 = arith.constant 0 : index
    %28 = vector.load %arg4[%c3_29, %c0_30, %c0_31] : memref<4x64x256xf32, #tpu.memory_space<vmem>>, vector<1x64x256xf32>
    %29 = vector.shape_cast %28 : vector<1x64x256xf32> to vector<64x256xf32>
    %cst_32 = arith.constant dense<0.000000e+00> : vector<8x256xf32>
    %30 = tpu.matmul %27, %29, %cst_32 {dimension_numbers = #tpu.dot_dimension_numbers<[1], [0], [0], [1], [0, 0, 1, 1], [], []>} : vector<8x64xf32>, vector<64x256xf32>, vector<8x256xf32> -> vector<8x256xf32>
    %31 = arith.addf %24, %30 : vector<8x256xf32>
    %c0_33 = arith.constant 0 : index
    %c0_34 = arith.constant 0 : index
    %32 = vector.load %arg10[%c0_33, %c0_34] : memref<72x256xf32, #tpu.memory_space<vmem>>, vector<8x256xf32>
    tpu.vector_store %arg10[%c0_33, %c0_34], %31 {strides = array<i32>} : memref<72x256xf32, #tpu.memory_space<vmem>>, vector<8x256xf32>,
    %c255_i32 = arith.constant 255 : i32
    %33 = tpu.dynamic_rotate %31 by %c255_i32 dim 1 : vector<8x256xf32>, i32 -> vector<8x256xf32>
    %c8 = arith.constant 8 : index
    %c0_35 = arith.constant 0 : index
    %34 = vector.load %arg10[%c8, %c0_35] : memref<72x256xf32, #tpu.memory_space<vmem>>, vector<8x256xf32>
    tpu.vector_store %arg10[%c8, %c0_35], %33 {strides = array<i32>} : memref<72x256xf32, #tpu.memory_space<vmem>>, vector<8x256xf32>,
    %c254_i32 = arith.constant 254 : i32
    %35 = tpu.dynamic_rotate %31 by %c254_i32 dim 1 : vector<8x256xf32>, i32 -> vector<8x256xf32>
    %c16 = arith.constant 16 : index
    %c0_36 = arith.constant 0 : index
    %36 = vector.load %arg10[%c16, %c0_36] : memref<72x256xf32, #tpu.memory_space<vmem>>, vector<8x256xf32>
    tpu.vector_store %arg10[%c16, %c0_36], %35 {strides = array<i32>} : memref<72x256xf32, #tpu.memory_space<vmem>>, vector<8x256xf32>,
    %c240_i32 = arith.constant 240 : i32
    %37 = tpu.dynamic_rotate %31 by %c240_i32 dim 1 : vector<8x256xf32>, i32 -> vector<8x256xf32>
    %c24 = arith.constant 24 : index
    %c0_37 = arith.constant 0 : index
    %38 = vector.load %arg10[%c24, %c0_37] : memref<72x256xf32, #tpu.memory_space<vmem>>, vector<8x256xf32>
    tpu.vector_store %arg10[%c24, %c0_37], %37 {strides = array<i32>} : memref<72x256xf32, #tpu.memory_space<vmem>>, vector<8x256xf32>,
    %c239_i32 = arith.constant 239 : i32
    %39 = tpu.dynamic_rotate %31 by %c239_i32 dim 1 : vector<8x256xf32>, i32 -> vector<8x256xf32>
    %c32 = arith.constant 32 : index
    %c0_38 = arith.constant 0 : index
    %40 = vector.load %arg10[%c32, %c0_38] : memref<72x256xf32, #tpu.memory_space<vmem>>, vector<8x256xf32>
    tpu.vector_store %arg10[%c32, %c0_38], %39 {strides = array<i32>} : memref<72x256xf32, #tpu.memory_space<vmem>>, vector<8x256xf32>,
    %c238_i32 = arith.constant 238 : i32
    %41 = tpu.dynamic_rotate %31 by %c238_i32 dim 1 : vector<8x256xf32>, i32 -> vector<8x256xf32>
    %c40 = arith.constant 40 : index
    %c0_39 = arith.constant 0 : index
    %42 = vector.load %arg10[%c40, %c0_39] : memref<72x256xf32, #tpu.memory_space<vmem>>, vector<8x256xf32>
    tpu.vector_store %arg10[%c40, %c0_39], %41 {strides = array<i32>} : memref<72x256xf32, #tpu.memory_space<vmem>>, vector<8x256xf32>,
    %c224_i32 = arith.constant 224 : i32
    %43 = tpu.dynamic_rotate %31 by %c224_i32 dim 1 : vector<8x256xf32>, i32 -> vector<8x256xf32>
    %c48 = arith.constant 48 : index
    %c0_40 = arith.constant 0 : index
    %44 = vector.load %arg10[%c48, %c0_40] : memref<72x256xf32, #tpu.memory_space<vmem>>, vector<8x256xf32>
    tpu.vector_store %arg10[%c48, %c0_40], %43 {strides = array<i32>} : memref<72x256xf32, #tpu.memory_space<vmem>>, vector<8x256xf32>,
    %c223_i32 = arith.constant 223 : i32
    %45 = tpu.dynamic_rotate %31 by %c223_i32 dim 1 : vector<8x256xf32>, i32 -> vector<8x256xf32>
    %c56 = arith.constant 56 : index
    %c0_41 = arith.constant 0 : index
    %46 = vector.load %arg10[%c56, %c0_41] : memref<72x256xf32, #tpu.memory_space<vmem>>, vector<8x256xf32>
    tpu.vector_store %arg10[%c56, %c0_41], %45 {strides = array<i32>} : memref<72x256xf32, #tpu.memory_space<vmem>>, vector<8x256xf32>,
    %c222_i32 = arith.constant 222 : i32
    %47 = tpu.dynamic_rotate %31 by %c222_i32 dim 1 : vector<8x256xf32>, i32 -> vector<8x256xf32>
    %c64 = arith.constant 64 : index
    %c0_42 = arith.constant 0 : index
    %48 = vector.load %arg10[%c64, %c0_42] : memref<72x256xf32, #tpu.memory_space<vmem>>, vector<8x256xf32>
    tpu.vector_store %arg10[%c64, %c0_42], %47 {strides = array<i32>} : memref<72x256xf32, #tpu.memory_space<vmem>>, vector<8x256xf32>,
    %c0_43 = arith.constant 0 : index
    %c0_44 = arith.constant 0 : index
    %49 = vector.load %arg5[%c0_43, %c0_44] : memref<8x72xf32, #tpu.memory_space<vmem>>, vector<8x72xf32>
    %c0_45 = arith.constant 0 : index
    %c0_46 = arith.constant 0 : index
    %50 = vector.load %arg10[%c0_45, %c0_46] : memref<72x256xf32, #tpu.memory_space<vmem>>, vector<72x256xf32>
    %cst_47 = arith.constant dense<0.000000e+00> : vector<8x256xf32>
    %51 = tpu.matmul %49, %50, %cst_47 {dimension_numbers = #tpu.dot_dimension_numbers<[1], [0], [0], [1], [0, 0, 1, 1], [], []>} : vector<8x72xf32>, vector<72x256xf32>, vector<8x256xf32> -> vector<8x256xf32>
    %c0_48 = arith.constant 0 : index
    %c0_49 = arith.constant 0 : index
    %52 = vector.load %arg6[%c0_48, %c0_49] : memref<8x1xf32, #tpu.memory_space<vmem>>, vector<8x1xf32>
    %53 = vector.broadcast %52 : vector<8x1xf32> to vector<8x256xf32>
    %54 = arith.addf %51, %53 : vector<8x256xf32>
    %cst_50 = arith.constant 0.000000e+00 : f32
    %55 = vector.broadcast %cst_50 : f32 to vector<8x256xf32>
    %56 = arith.maximumf %54, %55 : vector<8x256xf32>
    %c0_51 = arith.constant 0 : index
    %c0_52 = arith.constant 0 : index
    %57 = vector.load %arg11[%c0_51, %c0_52] : memref<72x256xf32, #tpu.memory_space<vmem>>, vector<8x256xf32>
    tpu.vector_store %arg11[%c0_51, %c0_52], %56 {strides = array<i32>} : memref<72x256xf32, #tpu.memory_space<vmem>>, vector<8x256xf32>,
    %c255_i32_53 = arith.constant 255 : i32
    %58 = tpu.dynamic_rotate %56 by %c255_i32_53 dim 1 : vector<8x256xf32>, i32 -> vector<8x256xf32>
    %c8_54 = arith.constant 8 : index
    %c0_55 = arith.constant 0 : index
    %59 = vector.load %arg11[%c8_54, %c0_55] : memref<72x256xf32, #tpu.memory_space<vmem>>, vector<8x256xf32>
    tpu.vector_store %arg11[%c8_54, %c0_55], %58 {strides = array<i32>} : memref<72x256xf32, #tpu.memory_space<vmem>>, vector<8x256xf32>,
    %c254_i32_56 = arith.constant 254 : i32
    %60 = tpu.dynamic_rotate %56 by %c254_i32_56 dim 1 : vector<8x256xf32>, i32 -> vector<8x256xf32>
    %c16_57 = arith.constant 16 : index
    %c0_58 = arith.constant 0 : index
    %61 = vector.load %arg11[%c16_57, %c0_58] : memref<72x256xf32, #tpu.memory_space<vmem>>, vector<8x256xf32>
    tpu.vector_store %arg11[%c16_57, %c0_58], %60 {strides = array<i32>} : memref<72x256xf32, #tpu.memory_space<vmem>>, vector<8x256xf32>,
    %c240_i32_59 = arith.constant 240 : i32
    %62 = tpu.dynamic_rotate %56 by %c240_i32_59 dim 1 : vector<8x256xf32>, i32 -> vector<8x256xf32>
    %c24_60 = arith.constant 24 : index
    %c0_61 = arith.constant 0 : index
    %63 = vector.load %arg11[%c24_60, %c0_61] : memref<72x256xf32, #tpu.memory_space<vmem>>, vector<8x256xf32>
    tpu.vector_store %arg11[%c24_60, %c0_61], %62 {strides = array<i32>} : memref<72x256xf32, #tpu.memory_space<vmem>>, vector<8x256xf32>,
    %c239_i32_62 = arith.constant 239 : i32
    %64 = tpu.dynamic_rotate %56 by %c239_i32_62 dim 1 : vector<8x256xf32>, i32 -> vector<8x256xf32>
    %c32_63 = arith.constant 32 : index
    %c0_64 = arith.constant 0 : index
    %65 = vector.load %arg11[%c32_63, %c0_64] : memref<72x256xf32, #tpu.memory_space<vmem>>, vector<8x256xf32>
    tpu.vector_store %arg11[%c32_63, %c0_64], %64 {strides = array<i32>} : memref<72x256xf32, #tpu.memory_space<vmem>>, vector<8x256xf32>,
    %c238_i32_65 = arith.constant 238 : i32
    %66 = tpu.dynamic_rotate %56 by %c238_i32_65 dim 1 : vector<8x256xf32>, i32 -> vector<8x256xf32>
    %c40_66 = arith.constant 40 : index
    %c0_67 = arith.constant 0 : index
    %67 = vector.load %arg11[%c40_66, %c0_67] : memref<72x256xf32, #tpu.memory_space<vmem>>, vector<8x256xf32>
    tpu.vector_store %arg11[%c40_66, %c0_67], %66 {strides = array<i32>} : memref<72x256xf32, #tpu.memory_space<vmem>>, vector<8x256xf32>,
    %c224_i32_68 = arith.constant 224 : i32
    %68 = tpu.dynamic_rotate %56 by %c224_i32_68 dim 1 : vector<8x256xf32>, i32 -> vector<8x256xf32>
    %c48_69 = arith.constant 48 : index
    %c0_70 = arith.constant 0 : index
    %69 = vector.load %arg11[%c48_69, %c0_70] : memref<72x256xf32, #tpu.memory_space<vmem>>, vector<8x256xf32>
    tpu.vector_store %arg11[%c48_69, %c0_70], %68 {strides = array<i32>} : memref<72x256xf32, #tpu.memory_space<vmem>>, vector<8x256xf32>,
    %c223_i32_71 = arith.constant 223 : i32
    %70 = tpu.dynamic_rotate %56 by %c223_i32_71 dim 1 : vector<8x256xf32>, i32 -> vector<8x256xf32>
    %c56_72 = arith.constant 56 : index
    %c0_73 = arith.constant 0 : index
    %71 = vector.load %arg11[%c56_72, %c0_73] : memref<72x256xf32, #tpu.memory_space<vmem>>, vector<8x256xf32>
    tpu.vector_store %arg11[%c56_72, %c0_73], %70 {strides = array<i32>} : memref<72x256xf32, #tpu.memory_space<vmem>>, vector<8x256xf32>,
    %c222_i32_74 = arith.constant 222 : i32
    %72 = tpu.dynamic_rotate %56 by %c222_i32_74 dim 1 : vector<8x256xf32>, i32 -> vector<8x256xf32>
    %c64_75 = arith.constant 64 : index
    %c0_76 = arith.constant 0 : index
    %73 = vector.load %arg11[%c64_75, %c0_76] : memref<72x256xf32, #tpu.memory_space<vmem>>, vector<8x256xf32>
    tpu.vector_store %arg11[%c64_75, %c0_76], %72 {strides = array<i32>} : memref<72x256xf32, #tpu.memory_space<vmem>>, vector<8x256xf32>,
    %c0_77 = arith.constant 0 : index
    %c0_78 = arith.constant 0 : index
    %74 = vector.load %arg7[%c0_77, %c0_78] : memref<8x72xf32, #tpu.memory_space<vmem>>, vector<8x72xf32>
    %c0_79 = arith.constant 0 : index
    %c0_80 = arith.constant 0 : index
    %75 = vector.load %arg11[%c0_79, %c0_80] : memref<72x256xf32, #tpu.memory_space<vmem>>, vector<72x256xf32>
    %cst_81 = arith.constant dense<0.000000e+00> : vector<8x256xf32>
    %76 = tpu.matmul %74, %75, %cst_81 {dimension_numbers = #tpu.dot_dimension_numbers<[1], [0], [0], [1], [0, 0, 1, 1], [], []>} : vector<8x72xf32>, vector<72x256xf32>, vector<8x256xf32> -> vector<8x256xf32>
    %c0_82 = arith.constant 0 : index
    %c0_83 = arith.constant 0 : index
    %77 = vector.load %arg8[%c0_82, %c0_83] : memref<8x1xf32, #tpu.memory_space<vmem>>, vector<8x1xf32>
    %78 = vector.broadcast %77 : vector<8x1xf32> to vector<8x256xf32>
    %79 = arith.addf %76, %78 : vector<8x256xf32>
    %cst_84 = arith.constant 0.000000e+00 : f32
    %80 = vector.broadcast %cst_84 : f32 to vector<8x256xf32>
    %81 = arith.maximumf %79, %80 : vector<8x256xf32>
    %c0_85 = arith.constant 0 : index
    %c0_86 = arith.constant 0 : index
    %c0_87 = arith.constant 0 : index
    %82 = vector.load %arg9[%c0_85, %c0_86, %c0_87] : memref<1x8x256xf32, #tpu.memory_space<vmem>>, vector<1x8x256xf32>
    %83 = vector.shape_cast %82 : vector<1x8x256xf32> to vector<8x256xf32>
    %84 = vector.shape_cast %81 : vector<8x256xf32> to vector<1x8x256xf32>
    tpu.vector_store %arg9[%c0_85, %c0_86, %c0_87], %84 {strides = array<i32>} : memref<1x8x256xf32, #tpu.memory_space<vmem>>, vector<1x8x256xf32>,
    return
  }
  func.func @transform_0(%arg0: i32) -> (i32, i32, i32) {
    %c0_i32 = arith.constant 0 : i32
    %c0_i32_0 = arith.constant 0 : i32
    %c0_i32_1 = arith.constant 0 : i32
    return %arg0, %c0_i32, %c0_i32_0 : i32, i32, i32
  }
  func.func @transform_1(%arg0: i32) -> (i32, i32, i32) {
    %c0_i32 = arith.constant 0 : i32
    %c0_i32_0 = arith.constant 0 : i32
    %c0_i32_1 = arith.constant 0 : i32
    return %arg0, %c0_i32, %c0_i32_0 : i32, i32, i32
  }
  func.func @transform_2(%arg0: i32) -> (i32, i32, i32) {
    %c0_i32 = arith.constant 0 : i32
    %c0_i32_0 = arith.constant 0 : i32
    %c0_i32_1 = arith.constant 0 : i32
    %c0_i32_2 = arith.constant 0 : i32
    return %c0_i32, %c0_i32_0, %c0_i32_1 : i32, i32, i32
  }
  func.func @transform_3(%arg0: i32) -> (i32, i32, i32) {
    %c0_i32 = arith.constant 0 : i32
    %c0_i32_0 = arith.constant 0 : i32
    %c0_i32_1 = arith.constant 0 : i32
    %c0_i32_2 = arith.constant 0 : i32
    return %c0_i32, %c0_i32_0, %c0_i32_1 : i32, i32, i32
  }
  func.func @transform_4(%arg0: i32) -> (i32, i32) {
    %c0_i32 = arith.constant 0 : i32
    %c0_i32_0 = arith.constant 0 : i32
    %c0_i32_1 = arith.constant 0 : i32
    return %c0_i32, %c0_i32_0 : i32, i32
  }
  func.func @transform_5(%arg0: i32) -> (i32, i32) {
    %c0_i32 = arith.constant 0 : i32
    %c0_i32_0 = arith.constant 0 : i32
    %c0_i32_1 = arith.constant 0 : i32
    return %c0_i32, %c0_i32_0 : i32, i32
  }
  func.func @transform_6(%arg0: i32) -> (i32, i32) {
    %c0_i32 = arith.constant 0 : i32
    %c0_i32_0 = arith.constant 0 : i32
    %c0_i32_1 = arith.constant 0 : i32
    return %c0_i32, %c0_i32_0 : i32, i32
  }
  func.func @transform_7(%arg0: i32) -> (i32, i32) {
    %c0_i32 = arith.constant 0 : i32
    %c0_i32_0 = arith.constant 0 : i32
    %c0_i32_1 = arith.constant 0 : i32
    return %c0_i32, %c0_i32_0 : i32, i32
  }
  func.func @transform_8(%arg0: i32) -> (i32, i32, i32) {
    %c0_i32 = arith.constant 0 : i32
    %c0_i32_0 = arith.constant 0 : i32
    %c0_i32_1 = arith.constant 0 : i32
    return %arg0, %c0_i32, %c0_i32_0 : i32, i32, i32
  }
}

</mosaic_0001>

<bundles_post_ra>
// kernel: up_along_forward.1
= control target key start
LH: loop header
LB: loop body
LE: loop exit
PB: predicated region body
PF: predicated region fallthrough
CT: control target
= control target key end

     0   :  { %s1599_s27 = smov 0   ;;  %s2027_s0 = inlined_call_operand.vmem [shape: f32[2,8,64], index: 0, kind: input, shape index: {}]   ;;  %s2028_s1 = inlined_call_operand.vmem [shape: f32[2,8,256], index: 1, kind: input, shape index: {}]   ;;  %s2029_s2 = inlined_call_operand.vmem [shape: f32[4,8,8], index: 2, kind: input, shape index: {}]   ;;  %s2030_s3 = inlined_call_operand.vmem [shape: f32[4,64,256], index: 3, kind: input, shape index: {}]   ;;  %s2031_s4 = inlined_call_operand.vmem [shape: f32[8,72], index: 4, kind: input, shape index: {}]   ;;  %s2032_s5 = inlined_call_operand.vmem [shape: f32[8,1], index: 5, kind: input, shape index: {}]   ;;  %s2033_s6 = inlined_call_operand.vmem [shape: f32[8,72], index: 6, kind: input, shape index: {}]   ;;  %s2034_s7 = inlined_call_operand.vmem [shape: f32[8,1], index: 7, kind: input, shape index: {}]   ;;  %s2035_s8 = inlined_call_operand.vmem [shape: f32[2,8,256], index: 8, kind: output, shape index: {}]  }
   0x1 LB: > { %s1412_s28 = sadd.s32 4294967295, %s1541_s27   ;;  %p1416_p0 = scmp.ge.s32.totalorder %s1541_s27, 1  ;;  %s1541_s27 = sphi %s1599_s27, %s18_s27  }
   0x2   : > { %p271_p1 = scmp.lt.s32.totalorder %s1541_s27, 3 }
   0x4   : > { %p272_p2 = pnand %p1416_p0, %p271_p1 }
   0x5   : > { %p309_p3 = scmp.lt.s32.totalorder (!%p272_p2), %s1412_s28, 1  ;;  %s1545_s11 = smov (!%p272_p2), 95  }
   0x6   : > { %275 = sbr.rel (%p272_p2) target bundleno = 1300 (0x514), region = 52  ;;  %s1546_s12 = smov (!%p272_p2), 94  }
   0x7   : > { %s1547_s13 = smov (!%p272_p2), 96   ;;  %s1548_s14 = smov (!%p272_p2), 110  }
   0x8   : > { %s1549_s15 = smov (!%p272_p2), 111   ;;  %s1550_s16 = smov (!%p272_p2), 112  }
   0x9   : > { %s1552_s17 = smov (!%p272_p2), 126   ;;  %s1553_s18 = smov (!%p272_p2), 127  }
   0xb   : > { %v1543_v0 = vmov 0.0   ;;  %s2037_s28 = smov (!%p309_p3, %s1412_s28), 1  ;;  %vm1544_vm0 = vmmov 0   ;;  %v326_v1 = vld [vmem:[%s2029_s2] sm:$0xff]  ;;  %vm327_vm1 = vcmask 64512   ;;  %v1424_v2 = vld [vmem:[%s2029_s2 + $0x8] sm:$0xff] }
   0xc   : > { %1495 = vmatprep.subr.mxu1 %v1543_v0  ;;  %1500 = vmatprep.subr.mxu0 %v1543_v0  ;;  %s1417_s29 = sshll.u32 %s2037_s28, 3  ;;  %v416_v4 = vld [vmem:[%s2030_s3 + $0x78] sm:$0xff]  ;;  %v415_v6 = vld [vmem:[%s2030_s3 + $0x70] sm:$0xff]  ;;  %v414_v8 = vld [vmem:[%s2030_s3 + $0x68] sm:$0xff]  ;;  %vm417_vm2 = vcmask 523264   ;;  %vm1099_vm11 = vcmask 588800  }
   0xd   : > { %1497 = vmatprep.mubr.msk.f32.mxu1 %vm1544_vm0, %v1543_v0  ;;  %1502 = vmatprep.mubr.msk.f32.mxu0 %vm1544_vm0, %v1543_v0  ;;  %s312_s10 = scalar_lea.vmem %s2027_s0, %s1417_s29  ;;  %v1441_v5 = vld [vmem:[%s2030_s3 + $0xf8] sm:$0xff]  ;;  %v1440_v7 = vld [vmem:[%s2030_s3 + $0xf0] sm:$0xff]  ;;  %v1439_v9 = vld [vmem:[%s2030_s3 + $0xe8] sm:$0xff]  ;;  %s1485_s29 = sshll.u32 %s2037_s28, 4 }
   0xe   : > { %v1625_v3 = vld [vmem:[%s312_s10] sm:$0xff]  ;;  %v412_v12 = vld [vmem:[%s2030_s3 + $0x58] sm:$0xff]  ;;  %v411_v14 = vld [vmem:[%s2030_s3 + $0x50] sm:$0xff]  ;;  %s317_s10 = scalar_lea.vmem %s2028_s1, %s1485_s29 }
   0xf   : > { %1496 = vmatpush3.msra.mxu1 %v1625_v3  ;;  %1501 = vmatpush3.msra.mxu0 %v1625_v3  ;;  %v413_v10 = vld [vmem:[%s2030_s3 + $0x60] sm:$0xff]  ;;  %v1437_v13 = vld [vmem:[%s2030_s3 + $0xd8] sm:$0xff]  ;;  %v1436_v15 = vld [vmem:[%s2030_s3 + $0xd0] sm:$0xff] }
  0x10   : > { %1498 = vmatmul.mubr.msk.f32.vlgmr.msra.gmra.mxu1 %vm327_vm1, %v326_v1  ;;  %1503 = vmatmul.mubr.msk.f32.vlgmr.msra.gmra.mxu0 %vm327_vm1, %v1424_v2  ;;  %v1438_v11 = vld [vmem:[%s2030_s3 + $0xe0] sm:$0xff]  ;;  %v410_v16 = vld [vmem:[%s2030_s3 + $0x48] sm:$0xff]  ;;  %v408_v20 = vld [vmem:[%s2030_s3 + $0x38] sm:$0xff] }
  0x11   : > { %437 = vmatprep.subr.mxu1 %v416_v4  ;;  %605 = vmatprep.subr.mxu0 %v1441_v5  ;;  %v1435_v17 = vld [vmem:[%s2030_s3 + $0xc8] sm:$0xff]  ;;  %v409_v18 = vld [vmem:[%s2030_s3 + $0x40] sm:$0xff]  ;;  %v1433_v21 = vld [vmem:[%s2030_s3 + $0xb8] sm:$0xff] }
  0x12   : > { %438 = vmatpush1.msra.mxu1 %v415_v6  ;;  %606 = vmatpush1.msra.mxu0 %v1440_v7  ;;  %v1434_v19 = vld [vmem:[%s2030_s3 + $0xc0] sm:$0xff]  ;;  %v407_v22 = vld [vmem:[%s2030_s3 + $0x30] sm:$0xff]  ;;  %v406_v24 = vld [vmem:[%s2030_s3 + $0x28] sm:$0xff] }
  0x13   : > { %439 = vmatprep.subr.mxu1 %v414_v8  ;;  %607 = vmatprep.subr.mxu0 %v1439_v9  ;;  %v1432_v23 = vld [vmem:[%s2030_s3 + $0xb0] sm:$0xff]  ;;  %v1431_v25 = vld [vmem:[%s2030_s3 + $0xa8] sm:$0xff]  ;;  %v405_v26 = vld [vmem:[%s2030_s3 + $0x20] sm:$0xff] }
  0x14   : > { %440 = vmatpush1.msra.mxu1 %v413_v10  ;;  %608 = vmatpush1.msra.mxu0 %v1438_v11  ;;  %v1430_v27 = vld [vmem:[%s2030_s3 + $0xa0] sm:$0xff]  ;;  %v404_v28 = vld [vmem:[%s2030_s3 + $0x18] sm:$0xff]  ;;  %v403_v30 = vld [vmem:[%s2030_s3 + $0x10] sm:$0xff] }
  0x15   : > { %441 = vmatprep.subr.mxu1 %v412_v12  ;;  %609 = vmatprep.subr.mxu0 %v1437_v13  ;;  %v1429_v29 = vld [vmem:[%s2030_s3 + $0x98] sm:$0xff]  ;;  %v1428_v31 = vld [vmem:[%s2030_s3 + $0x90] sm:$0xff]  ;;  %v402_v32 = vld [vmem:[%s2030_s3 + $0x8] sm:$0xff] }
  0x16   : > { %442 = vmatpush1.msra.mxu1 %v411_v14  ;;  %610 = vmatpush1.msra.mxu0 %v1436_v15  ;;  %v1427_v33 = vld [vmem:[%s2030_s3 + $0x88] sm:$0xff]  ;;  %v401_v34 = vld [vmem:[%s2030_s3] sm:$0xff]  ;;  %v1460_v38 = vld [vmem:[%s2030_s3 + $0x178] sm:$0xff] }
  0x17   : > { %443 = vmatprep.subr.mxu1 %v410_v16  ;;  %611 = vmatprep.subr.mxu0 %v1435_v17  ;;  %v1426_v35 = vld [vmem:[%s2030_s3 + $0x80] sm:$0xff]  ;;  %v1479_v39 = vld [vmem:[%s2030_s3 + $0x1f8] sm:$0xff]  ;;  %v1443_v42 = vld [vmem:[%s2029_s2 + $0x10] sm:$0xff] }
  0x18   : > { %444 = vmatpush1.msra.mxu1 %v409_v18  ;;  %612 = vmatpush1.msra.mxu0 %v1434_v19  ;;  %v1462_v43 = vld [vmem:[%s2029_s2 + $0x18] sm:$0xff]  ;;  %v1459_v44 = vld [vmem:[%s2030_s3 + $0x170] sm:$0xff]  ;;  %v1458_v46 = vld [vmem:[%s2030_s3 + $0x168] sm:$0xff] }
  0x19   : > { %445 = vmatprep.subr.mxu1 %v408_v20  ;;  %613 = vmatprep.subr.mxu0 %v1433_v21  ;;  %v1478_v45 = vld [vmem:[%s2030_s3 + $0x1f0] sm:$0xff]  ;;  %v1477_v47 = vld [vmem:[%s2030_s3 + $0x1e8] sm:$0xff]  ;;  %v1457_v48 = vld [vmem:[%s2030_s3 + $0x160] sm:$0xff] }
  0x1a   : > { %446 = vmatpush1.msra.mxu1 %v407_v22  ;;  %614 = vmatpush1.msra.mxu0 %v1432_v23  ;;  %v1476_v49 = vld [vmem:[%s2030_s3 + $0x1e0] sm:$0xff]  ;;  %v1456_v50 = vld [vmem:[%s2030_s3 + $0x158] sm:$0xff]  ;;  %v1455_v52 = vld [vmem:[%s2030_s3 + $0x150] sm:$0xff] }
  0x1b   : > { %447 = vmatprep.subr.mxu1 %v406_v24  ;;  %615 = vmatprep.subr.mxu0 %v1431_v25  ;;  %v1475_v51 = vld [vmem:[%s2030_s3 + $0x1d8] sm:$0xff]  ;;  %v1474_v53 = vld [vmem:[%s2030_s3 + $0x1d0] sm:$0xff]  ;;  %v1454_v54 = vld [vmem:[%s2030_s3 + $0x148] sm:$0xff] }
  0x1c   : > { %448 = vmatpush1.msra.mxu1 %v405_v26  ;;  %616 = vmatpush1.msra.mxu0 %v1430_v27  ;;  %v1473_v55 = vld [vmem:[%s2030_s3 + $0x1c8] sm:$0xff]  ;;  %v1453_v56 = vld [vmem:[%s2030_s3 + $0x140] sm:$0xff]  ;;  %v1452_v58 = vld [vmem:[%s2030_s3 + $0x138] sm:$0xff] }
  0x1d   : > { %449 = vmatprep.subr.mxu1 %v404_v28  ;;  %617 = vmatprep.subr.mxu0 %v1429_v29  ;;  %v1472_v57 = vld [vmem:[%s2030_s3 + $0x1c0] sm:$0xff]  ;;  %v1471_v59 = vld [vmem:[%s2030_s3 + $0x1b8] sm:$0xff]  ;;  %v1451_v60 = vld [vmem:[%s2030_s3 + $0x130] sm:$0xff] }
  0x1e   : > { %450 = vmatpush1.msra.mxu1 %v403_v30  ;;  %618 = vmatpush1.msra.mxu0 %v1428_v31  ;;  %v1470_v61 = vld [vmem:[%s2030_s3 + $0x1b0] sm:$0xff]  ;;  %v1450_v62 = vld [vmem:[%s2030_s3 + $0x128] sm:$0xff]  ;;  %v1449_v1 = vld [vmem:[%s2030_s3 + $0x120] sm:$0xff] }
  0x1f   : > { %451 = vmatprep.subr.mxu1 %v402_v32  ;;  %619 = vmatprep.subr.mxu0 %v1427_v33  ;;  %v1469_v63 = vld [vmem:[%s2030_s3 + $0x1a8] sm:$0xff]  ;;  %v1468_v2 = vld [vmem:[%s2030_s3 + $0x1a0] sm:$0xff]  ;;  %v1467_v4 = vld [vmem:[%s2030_s3 + $0x198] sm:$0xff] }
  0x20   : > { %452 = vmatpush1.msra.mxu1 %v401_v34  ;;  %485 = vmatprep.mubr.f32.mxu1 %v1543_v0  ;;  %v1447_v5 = vld [vmem:[%s2030_s3 + $0x110] sm:$0xff]  ;;  %v1446_v7 = vld [vmem:[%s2030_s3 + $0x108] sm:$0xff]  ;;  %v1445_v9 = vld [vmem:[%s2030_s3 + $0x100] sm:$0xff] }
  0x21   : > { %653 = vmatprep.mubr.f32.mxu0 %v1543_v0  ;;  %1505 = vmatprep.subr.mxu1 %v1543_v0  ;;  %v1466_v6 = vld [vmem:[%s2030_s3 + $0x190] sm:$0xff]  ;;  %v1465_v8 = vld [vmem:[%s2030_s3 + $0x188] sm:$0xff]  ;;  %v1464_v10 = vld [vmem:[%s2030_s3 + $0x180] sm:$0xff] }
  0x22   : > { %620 = vmatpush1.msra.mxu0 %v1426_v35  ;;  %v324_v11 = vld [vmem:[%s317_s10] sm:$0xff]  ;;  %v325_v14 = vld [vmem:[%s317_s10 + $0x8] sm:$0xff]  ;;  %s322_s10 = scalar_lea.vmem %s2035_s8, %s1485_s29 }
  0x23   : > { %1510 = vmatprep.subr.mxu0 %v1543_v0  ;;  %v1093_v33 = vld [vmem:[%s2032_s5] sm:$0xff] }
  0xd0   : > { %v397_v36 = vpop.f32.mrf.mxu1  ;;  %v565_v37 = vpop.f32.mrf.mxu0 }
  0xd1   : > { %1423 = vmatmul.mubr.msk.f32.vlgmr.msra.gmra.mxu1 %vm417_vm2, %v397_v36  ;;  %1442 = vmatmul.mubr.msk.f32.vlgmr.msra.gmra.mxu0 %vm417_vm2, %v565_v37  ;;  %v1004_v37 = vlaneseq }
  0xd2   : > { %1506 = vmatpush3.msra.mxu1 %v1625_v3  ;;  %v1499_v40 = vpop.f32.mrf.mxu1  ;;  %v1504_v41 = vpop.f32.mrf.mxu0  ;;  %1511 = vmatpush3.msra.mxu0 %v1625_v3  ;;  %v1448_v3 = vld [vmem:[%s2030_s3 + $0x118] sm:$0xff] }
  0xd3   : > { %1507 = vmatprep.mubr.msk.f32.mxu1 %vm1544_vm0, %v1543_v0  ;;  %1512 = vmatprep.mubr.msk.f32.mxu0 %vm1544_vm0, %v1543_v0 }
  0xd4   : > { %773 = vmatprep.subr.mxu1 %v1460_v38  ;;  %941 = vmatprep.subr.mxu0 %v1479_v39  ;;  %v1894_v39 = vand.u32 127, %v1004_v37 }
  0xd5   : > { %1508 = vmatmul.mubr.msk.f32.vlgmr.msra.gmra.mxu1 %vm327_vm1, %v1443_v42  ;;  %1513 = vmatmul.mubr.msk.f32.vlgmr.msra.gmra.mxu0 %vm327_vm1, %v1462_v43 }
  0xd6   : > { %774 = vmatpush1.msra.mxu1 %v1459_v44  ;;  %942 = vmatpush1.msra.mxu0 %v1478_v45  ;;  %vm1069_vm3 = vcmp.lt.s32.totalorder %v1894_v39, 94  ;;  %vm1060_vm4 = vcmp.lt.s32.totalorder %v1894_v39, 95  ;;  %vm1051_vm5 = vcmp.lt.s32.totalorder %v1894_v39, 96  ;;  %vm1042_vm6 = vcmp.lt.s32.totalorder %v1894_v39, 110 }
  0xd7   : > { %775 = vmatprep.subr.mxu1 %v1458_v46  ;;  %943 = vmatprep.subr.mxu0 %v1477_v47  ;;  %vm1033_vm7 = vcmp.lt.s32.totalorder %v1894_v39, 111  ;;  %vm1024_vm8 = vcmp.lt.s32.totalorder %v1894_v39, 112  ;;  %vm1015_vm9 = vcmp.lt.s32.totalorder %v1894_v39, 126  ;;  %vm1006_vm10 = vcmp.lt.s32.totalorder %v1894_v39, 127 }
  0xd8   : > { %776 = vmatpush1.msra.mxu1 %v1457_v48  ;;  %944 = vmatpush1.msra.mxu0 %v1476_v49 }
  0xd9   : > { %777 = vmatprep.subr.mxu1 %v1456_v50  ;;  %945 = vmatprep.subr.mxu0 %v1475_v51 }
  0xda   : > { %778 = vmatpush1.msra.mxu1 %v1455_v52  ;;  %946 = vmatpush1.msra.mxu0 %v1474_v53 }
  0xdb   : > { %779 = vmatprep.subr.mxu1 %v1454_v54  ;;  %947 = vmatprep.subr.mxu0 %v1473_v55 }
  0xdc   : > { %780 = vmatpush1.msra.mxu1 %v1453_v56  ;;  %948 = vmatpush1.msra.mxu0 %v1472_v57 }
  0xdd   : > { %781 = vmatprep.subr.mxu1 %v1452_v58  ;;  %949 = vmatprep.subr.mxu0 %v1471_v59 }
  0xde   : > { %782 = vmatpush1.msra.mxu1 %v1451_v60  ;;  %950 = vmatpush1.msra.mxu0 %v1470_v61 }
  0xdf   : > { %783 = vmatprep.subr.mxu1 %v1450_v62  ;;  %951 = vmatprep.subr.mxu0 %v1469_v63 }
  0xe0   : > { %821 = vmatprep.mubr.f32.mxu1 %v1543_v0  ;;  %989 = vmatprep.mubr.f32.mxu0 %v1543_v0 }
  0xe1   : > { %784 = vmatpush1.msra.mxu1 %v1449_v1  ;;  %952 = vmatpush1.msra.mxu0 %v1468_v2 }
  0xe2   : > { %785 = vmatprep.subr.mxu1 %v1448_v3  ;;  %953 = vmatprep.subr.mxu0 %v1467_v4 }
  0xe3   : > { %786 = vmatpush1.msra.mxu1 %v1447_v5  ;;  %954 = vmatpush1.msra.mxu0 %v1466_v6  ;;  %v1074_v5 = vld [vmem:[%s2031_s4] sm:$0xff] }
  0xe4   : > { %787 = vmatprep.subr.mxu1 %v1446_v7  ;;  %955 = vmatprep.subr.mxu0 %v1465_v8 }
  0xe5   : > { %788 = vmatpush1.msra.mxu1 %v1445_v9  ;;  %956 = vmatpush1.msra.mxu0 %v1464_v10 }
 0x191   : > { %v487_v12 = vpop.f32.mrf.mxu1  ;;  %v655_v13 = vpop.f32.mrf.mxu0 }
 0x192   : > { %v492_v15 = vadd.f32 %v487_v12, %v324_v11 }
 0x193   : > { %v489_v16 = vpop.f32.mrf.mxu1  ;;  %v657_v17 = vpop.f32.mrf.mxu0 }
 0x194   : > { %v660_v18 = vadd.f32 %v655_v13, %v492_v15  ;;  %v493_v19 = vadd.f32 %v489_v16, %v325_v14  ;;  %v1261_v13 = vld [vmem:[%s2034_s7] sm:$0xff] }
 0x195   : > { %v733_v20 = vpop.f32.mrf.mxu1  ;;  %v901_v21 = vpop.f32.mrf.mxu0 }
 0x196   : > { %v661_v22 = vadd.f32 %v657_v17, %v493_v19  ;;  %1461 = vmatmul.mubr.msk.f32.vlgmr.msra.gmra.mxu1 %vm417_vm2, %v733_v20  ;;  %1480 = vmatmul.mubr.msk.f32.vlgmr.msra.gmra.mxu0 %vm417_vm2, %v901_v21 }
 0x197   : > { %v1509_v23 = vpop.f32.mrf.mxu1  ;;  %v1514_v24 = vpop.f32.mrf.mxu0  ;;  %1167 = vmatprep.mubr.f32.mxu1 %v1543_v0  ;;  %1334 = vmatprep.mubr.f32.mxu0 %v1543_v0  ;;  %v1551_v0 = vmov 0  }
 0x198   : > { %1534 = vset.pattern.permute.xlu0 %v1551_v0 }
 0x256   : > { %v823_v25 = vpop.f32.mrf.mxu1  ;;  %v991_v27 = vpop.f32.mrf.mxu0 }
 0x257   : > { %v828_v26 = vadd.f32 %v823_v25, %v660_v18 }
 0x258   : > { %v825_v28 = vpop.f32.mrf.mxu1  ;;  %v993_v31 = vpop.f32.mrf.mxu0 }
 0x259   : > { %v1855_v29 = vadd.f32 %v991_v27, %v828_v26  ;;  %v829_v30 = vadd.f32 %v825_v28, %v661_v22 }
 0x25b   : > { %1056 = vrot.lane.b32.xlu1 %v1855_v29, %s1545_s11  ;;  %1065 = vrot.lane.b32.xlu0 %v1855_v29, %s1546_s12  ;;  %v1861_v32 = vadd.f32 %v993_v31, %v829_v30 }
 0x25f   : > { %1047 = vrot.lane.b32.xlu0 %v1855_v29, %s1547_s13  ;;  %1058 = vrot.lane.b32.xlu1 %v1861_v32, %s1545_s11 }
 0x263   : > { %1038 = vrot.lane.b32.xlu0 %v1855_v29, %s1548_s14  ;;  %1049 = vrot.lane.b32.xlu1 %v1861_v32, %s1547_s13 }
 0x267   : > { %1040 = vrot.lane.b32.xlu1 %v1861_v32, %s1548_s14  ;;  %1067 = vrot.lane.b32.xlu0 %v1861_v32, %s1546_s12 }
 0x26b   : > { %1031 = vrot.lane.b32.xlu1 %v1861_v32, %s1549_s15  ;;  %1029 = vrot.lane.b32.xlu0 %v1855_v29, %s1549_s15 }
 0x26f   : > { %1022 = vrot.lane.b32.xlu1 %v1861_v32, %s1550_s16  ;;  %1020 = vrot.lane.b32.xlu0 %v1855_v29, %s1550_s16 }
 0x273   : > { %1013 = vrot.lane.b32.xlu1 %v1861_v32, %s1552_s17  ;;  %1011 = vrot.lane.b32.xlu0 %v1855_v29, %s1552_s17 }
 0x277   : > { %1002 = vrot.lane.b32.xlu1 %v1861_v32, %s1553_s18  ;;  %1000 = vrot.lane.b32.xlu0 %v1855_v29, %s1553_s18 }
 0x27b   : > { %1096 = vperm.xlu0 %1534, %v1093_v33  }
 0x2cd   : > { %v1057_v34 = vpop.permute.xlu1 %1056  ;;  %v1066_v35 = vpop.permute.xlu0 %1065 }
 0x2d1   : > { %v1048_v36 = vpop.permute.xlu0 %1047  ;;  %v1059_v38 = vpop.permute.xlu1 %1058 }
 0x2d2   : > { %v1062_v46 = vsel %vm1060_vm4, %v1059_v38, %v1057_v34  ;;  %v1061_v47 = vsel %vm1060_vm4, %v1057_v34, %v1059_v38 }
 0x2d5   : > { %v1039_v40 = vpop.permute.xlu0 %1038  ;;  %v1050_v41 = vpop.permute.xlu1 %1049 }
 0x2d6   : > { %v1053_v50 = vsel %vm1051_vm5, %v1050_v41, %v1048_v36  ;;  %v1052_v51 = vsel %vm1051_vm5, %v1048_v36, %v1050_v41 }
 0x2d9   : > { %v1041_v42 = vpop.permute.xlu1 %1040  ;;  %v1068_v43 = vpop.permute.xlu0 %1067 }
 0x2da   : > { %v1070_v44 = vsel %vm1069_vm3, %v1066_v35, %v1068_v43  ;;  %v1071_v45 = vsel %vm1069_vm3, %v1068_v43, %v1066_v35  ;;  %v1044_v52 = vsel %vm1042_vm6, %v1041_v42, %v1039_v40  ;;  %v1043_v53 = vsel %vm1042_vm6, %v1039_v40, %v1041_v42 }
 0x2db   : > { %1117 = vmatprep.subr.mxu1 %v1071_v45 }
 0x2dc   : > { %1118 = vmatpush1.msra.mxu1 %v1070_v44 }
 0x2dd   : > { %v1032_v48 = vpop.permute.xlu1 %1031  ;;  %1119 = vmatprep.subr.mxu1 %v1062_v46  ;;  %v1030_v49 = vpop.permute.xlu0 %1029  ;;  %v1242_v46 = vld [vmem:[%s2033_s6] sm:$0xff] }
 0x2de   : > { %1120 = vmatpush1.msra.mxu1 %v1061_v47  ;;  %v1035_v56 = vsel %vm1033_vm7, %v1032_v48, %v1030_v49  ;;  %v1034_v57 = vsel %vm1033_vm7, %v1030_v49, %v1032_v48 }
 0x2df   : > { %1121 = vmatprep.subr.mxu1 %v1053_v50 }
 0x2e0   : > { %1122 = vmatpush1.msra.mxu1 %v1052_v51 }
 0x2e1   : > { %v1023_v54 = vpop.permute.xlu1 %1022  ;;  %1123 = vmatprep.subr.mxu1 %v1044_v52  ;;  %v1021_v55 = vpop.permute.xlu0 %1020 }
 0x2e2   : > { %1124 = vmatpush1.msra.mxu1 %v1043_v53  ;;  %v1026_v58 = vsel %vm1024_vm8, %v1023_v54, %v1021_v55  ;;  %v1025_v59 = vsel %vm1024_vm8, %v1021_v55, %v1023_v54 }
 0x2e3   : > { %1125 = vmatprep.subr.mxu1 %v1035_v56 }
 0x2e4   : > { %1126 = vmatpush1.msra.mxu1 %v1034_v57 }
 0x2e5   : > { %v1014_v60 = vpop.permute.xlu1 %1013  ;;  %1127 = vmatprep.subr.mxu1 %v1026_v58  ;;  %v1012_v61 = vpop.permute.xlu0 %1011 }
 0x2e6   : > { %v1016_v62 = vsel %vm1015_vm9, %v1012_v61, %v1014_v60  ;;  %1128 = vmatpush1.msra.mxu1 %v1025_v59  ;;  %v1017_v63 = vsel %vm1015_vm9, %v1014_v60, %v1012_v61 }
 0x2e7   : > { %1129 = vmatprep.subr.mxu1 %v1017_v63 }
 0x2e8   : > { %1130 = vmatpush1.msra.mxu1 %v1016_v62 }
 0x2e9   : > { %v1003_v1 = vpop.permute.xlu1 %1002  ;;  %v1001_v2 = vpop.permute.xlu0 %1000 }
 0x2ea   : > { %v1007_v3 = vsel %vm1006_vm10, %v1001_v2, %v1003_v1  ;;  %v1008_v4 = vsel %vm1006_vm10, %v1003_v1, %v1001_v2 }
 0x2eb   : > { %1131 = vmatprep.subr.mxu1 %v1008_v4 }
 0x2ec   : > { %1132 = vmatpush1.msra.mxu1 %v1007_v3 }
 0x2ed   : > { %1133 = vmatprep.subr.mxu1 %v1861_v32 }
 0x2ee   : > { %1134 = vmatpush1.msra.mxu1 %v1855_v29 }
 0x2ef   : > { %1481 = vmatmul.mubr.msk.f32.vlgmr.msra.gmra.mxu1 %vm1099_vm11, %v1074_v5 }
 0x2f6   : > { %v1097_v6 = vpop.permute.xlu0 %1096 }
 0x3af   : > { %v1169_v7 = vpop.f32.mrf.mxu1 }
 0x3b0   : > { %v1170_v8 = vadd.f32 %v1169_v7, %v1097_v6 }
 0x3b1   : > { %v1171_v9 = vpop.f32.mrf.mxu1 }
 0x3b2   : > { %v1942_v10 = vmax.f32 %v1170_v8, 0.0  ;;  %v1172_v11 = vadd.f32 %v1171_v9, %v1097_v6 }
 0x3b4   : > { %1226 = vrot.lane.b32.xlu0 %v1942_v10, %s1545_s11  ;;  %1234 = vrot.lane.b32.xlu1 %v1942_v10, %s1546_s12  ;;  %v1948_v12 = vmax.f32 %v1172_v11, 0.0 }
 0x3b8   : > { %1218 = vrot.lane.b32.xlu0 %v1942_v10, %s1547_s13  ;;  %1236 = vrot.lane.b32.xlu1 %v1948_v12, %s1546_s12 }
 0x3bc   : > { %1210 = vrot.lane.b32.xlu0 %v1942_v10, %s1548_s14  ;;  %1228 = vrot.lane.b32.xlu1 %v1948_v12, %s1545_s11 }
 0x3c0   : > { %1202 = vrot.lane.b32.xlu0 %v1942_v10, %s1549_s15  ;;  %1220 = vrot.lane.b32.xlu1 %v1948_v12, %s1547_s13 }
 0x3c4   : > { %1194 = vrot.lane.b32.xlu0 %v1942_v10, %s1550_s16  ;;  %1212 = vrot.lane.b32.xlu1 %v1948_v12, %s1548_s14 }
 0x3c8   : > { %1186 = vrot.lane.b32.xlu0 %v1942_v10, %s1552_s17  ;;  %1204 = vrot.lane.b32.xlu1 %v1948_v12, %s1549_s15 }
 0x3cc   : > { %1178 = vrot.lane.b32.xlu0 %v1942_v10, %s1553_s18  ;;  %1196 = vrot.lane.b32.xlu1 %v1948_v12, %s1550_s16 }
 0x3d0   : > { %1264 = vperm.xlu0 %1534, %v1261_v13   ;;  %1188 = vrot.lane.b32.xlu1 %v1948_v12, %s1552_s17 }
 0x3d4   : > { %1180 = vrot.lane.b32.xlu1 %v1948_v12, %s1553_s18 }
 0x426   : > { %v1227_v14 = vpop.permute.xlu0 %1226  ;;  %v1235_v15 = vpop.permute.xlu1 %1234 }
 0x42a   : > { %v1219_v16 = vpop.permute.xlu0 %1218  ;;  %v1237_v17 = vpop.permute.xlu1 %1236 }
 0x42b   : > { %v1238_v18 = vsel %vm1069_vm3, %v1235_v15, %v1237_v17  ;;  %v1239_v19 = vsel %vm1069_vm3, %v1237_v17, %v1235_v15 }
 0x42c   : > { %1284 = vmatprep.subr.mxu0 %v1239_v19 }
 0x42d   : > { %1285 = vmatpush1.msra.mxu0 %v1238_v18 }
 0x42e   : > { %v1211_v20 = vpop.permute.xlu0 %1210  ;;  %v1229_v21 = vpop.permute.xlu1 %1228 }
 0x42f   : > { %v1230_v22 = vsel %vm1060_vm4, %v1227_v14, %v1229_v21  ;;  %v1231_v23 = vsel %vm1060_vm4, %v1229_v21, %v1227_v14 }
 0x430   : > { %1286 = vmatprep.subr.mxu0 %v1231_v23 }
 0x431   : > { %1287 = vmatpush1.msra.mxu0 %v1230_v22 }
 0x432   : > { %v1221_v24 = vpop.permute.xlu1 %1220  ;;  %v1203_v27 = vpop.permute.xlu0 %1202 }
 0x433   : > { %v1222_v25 = vsel %vm1051_vm5, %v1219_v16, %v1221_v24  ;;  %v1223_v26 = vsel %vm1051_vm5, %v1221_v24, %v1219_v16 }
 0x434   : > { %1288 = vmatprep.subr.mxu0 %v1223_v26 }
 0x435   : > { %1289 = vmatpush1.msra.mxu0 %v1222_v25 }
 0x436   : > { %v1213_v28 = vpop.permute.xlu1 %1212  ;;  %v1195_v31 = vpop.permute.xlu0 %1194 }
 0x437   : > { %v1214_v29 = vsel %vm1042_vm6, %v1211_v20, %v1213_v28  ;;  %v1215_v30 = vsel %vm1042_vm6, %v1213_v28, %v1211_v20 }
 0x438   : > { %1290 = vmatprep.subr.mxu0 %v1215_v30 }
 0x439   : > { %1291 = vmatpush1.msra.mxu0 %v1214_v29 }
 0x43a   : > { %v1205_v32 = vpop.permute.xlu1 %1204  ;;  %v1187_v37 = vpop.permute.xlu0 %1186 }
 0x43b   : > { %v1206_v0 = vsel %vm1033_vm7, %v1203_v27, %v1205_v32  ;;  %v1207_v33 = vsel %vm1033_vm7, %v1205_v32, %v1203_v27 }
 0x43c   : > { %1292 = vmatprep.subr.mxu0 %v1207_v33 }
 0x43d   : > { %1293 = vmatpush1.msra.mxu0 %v1206_v0 }
 0x43e   : > { %v1197_v34 = vpop.permute.xlu1 %1196  ;;  %v1179_v42 = vpop.permute.xlu0 %1178 }
 0x43f   : > { %v1198_v35 = vsel %vm1024_vm8, %v1195_v31, %v1197_v34  ;;  %v1199_v36 = vsel %vm1024_vm8, %v1197_v34, %v1195_v31 }
 0x440   : > { %1294 = vmatprep.subr.mxu0 %v1199_v36 }
 0x441   : > { %1295 = vmatpush1.msra.mxu0 %v1198_v35 }
 0x442   : > { %v1189_v38 = vpop.permute.xlu1 %1188 }
 0x443   : > { %v1190_v40 = vsel %vm1015_vm9, %v1187_v37, %v1189_v38  ;;  %v1191_v41 = vsel %vm1015_vm9, %v1189_v38, %v1187_v37 }
 0x444   : > { %1296 = vmatprep.subr.mxu0 %v1191_v41 }
 0x445   : > { %1297 = vmatpush1.msra.mxu0 %v1190_v40 }
 0x446   : > { %v1181_v43 = vpop.permute.xlu1 %1180 }
 0x447   : > { %v1182_v44 = vsel %vm1006_vm10, %v1179_v42, %v1181_v43  ;;  %v1183_v45 = vsel %vm1006_vm10, %v1181_v43, %v1179_v42 }
 0x448   : > { %1298 = vmatprep.subr.mxu0 %v1183_v45 }
 0x449   : > { %1299 = vmatpush1.msra.mxu0 %v1182_v44 }
 0x44a   : > { %1300 = vmatprep.subr.mxu0 %v1948_v12 }
 0x44b   : > { %1301 = vmatpush1.msra.mxu0 %v1942_v10  ;;  %v1265_v47 = vpop.permute.xlu0 %1264 }
 0x44c   : > { %1482 = vmatmul.mubr.msk.f32.vlgmr.msra.gmra.mxu0 %vm1099_vm11, %v1242_v46 }
 0x50c   : > { %v1336_v48 = vpop.f32.mrf.mxu0 }
 0x50d   : > { %v1337_v49 = vadd.f32 %v1336_v48, %v1265_v47 }
 0x50e   : > { %v1338_v39 = vpop.f32.mrf.mxu0 }
 0x50f   : > { %v1341_v50 = vmax.f32 %v1337_v49, 0.0  ;;  %v1339_v51 = vadd.f32 %v1338_v39, %v1265_v47 }
 0x511   : > { %1343 = vst [vmem:[%s322_s10] sm:$0xff] %v1341_v50  ;;  %v1342_v52 = vmax.f32 %v1339_v51, 0.0 }
 0x513   : > { %1344 = vst [vmem:[%s322_s10 + $0x8] sm:$0xff] %v1342_v52 }
 0x514 PF: > { %s18_s27 = sadd.s32 1, %s1541_s27  }
 0x515   : > { %p15_p4 = scmp.ge.s32.totalorder %s18_s27, 4  }
 0x517   :  { %17 = sbr.rel (!%p15_p4) target bundleno = 1 (0x1), region = 91 }

</bundles_post_ra>
